<compile_context>
chip_gen: v7x
topology: tpu7x:2x2x1
jax: 0.10.0
libtpu: 0.0.40
codegen_flags: <defaults>
</compile_context>

<pallas_src>
import functools

import jax
import jax.numpy as jnp
from jax import lax
from jax.experimental import pallas as pl
from jax.experimental.pallas import tpu as pltpu


def _round_up(x, m):
    return (x + m - 1) // m * m


def _convlstm_kernel(x_ref, w_ref, b_ref, c_ref, h_out_ref, c_out_ref, *,
                     C_out, tap_offsets, m_out):
    """One grid step = `images_per_block` images folded into the lane axis.

    x_ref    : (1, C_all, L_in)         padded [x ; h_prev], Wp-strided flat layout
    w_ref    : (KH*KW, 4*C_out, C_all)  per-tap conv weights (gates^T form)
    b_ref    : (4*C_out, 1)             conv bias, f32
    c_ref    : (1, C_out, m_out)        previous cell state, f32, same flat layout
    h_out_ref, c_out_ref : (1, C_out, m_out)
    """
    # KH*KW accumulating MXU dots against lane-shifted views of the padded
    # input.  Offsets are static Python ints -> fully unrolled; accumulation
    # is f32 via preferred_element_type even with bf16 operands.
    acc = None
    for t, off in enumerate(tap_offsets):
        rhs = x_ref[0, :, pl.ds(off, m_out)]            # (C_all, m_out)
        part = jnp.dot(w_ref[t], rhs, preferred_element_type=jnp.float32)
        acc = part if acc is None else acc + part
    gates = acc + b_ref[...]                            # f32 bias add (no bf16 rounding)

    # torch.chunk(gates, 4, dim=1) order in the reference module: i, f, o, g.
    # These are sublane-aligned row slices (C_out is a multiple of 8 here).
    i = jax.nn.sigmoid(gates[0 * C_out:1 * C_out])
    f = jax.nn.sigmoid(gates[1 * C_out:2 * C_out])
    o = jax.nn.sigmoid(gates[2 * C_out:3 * C_out])
    g = jnp.tanh(gates[3 * C_out:4 * C_out])

    c_prev = c_ref[0]                                   # (C_out, m_out), f32
    c_next = f * c_prev + i * g
    h_next = o * jnp.tanh(c_next)

    h_out_ref[0] = h_next.astype(h_out_ref.dtype)
    c_out_ref[0] = c_next.astype(c_out_ref.dtype)


def conv_lstm_cell(x, h_prev, c_prev, weight, bias, *, padding,
                   matmul_dtype=jnp.bfloat16, h_dtype=jnp.float32,
                   images_per_block=None):
    """ConvLSTMCell.forward.

    x      : (N, C_in,  H, W)   NCHW (PyTorch convention)
    h_prev : (N, C_out, H, W)
    c_prev : (N, C_out, H, W)
    weight : (4*C_out, C_in + C_out, KH, KW)   PyTorch OIHW conv weight
    bias   : (4*C_out,)
    matmul_dtype : conv-matmul operand dtype (default bf16 on all generations;
        accumulation and all gate/state math stay f32).
    h_dtype : output dtype of h_next (c_next always f32).
    images_per_block : images folded into the lane axis per grid step.
        Default keeps >= 2 grid steps when the batch allows (v7x megacore).
    returns (h_next, c_next)
    """
    N, C_in, H, W = x.shape
    C_out = h_prev.shape[1]
    C_all = C_in + C_out
    KH, KW = weight.shape[2], weight.shape[3]
    p = padding

    # The recurrence (c_prev shape == gates shape) requires a 'same' conv.
    if (H + 2 * p - KH + 1, W + 2 * p - KW + 1) != (H, W):
        raise ValueError(
            "ConvLSTMCell requires kernel_size == 2*padding + 1 (same-size conv)")

    if images_per_block is None:
        images_per_block = N // 2 if (N >= 2 and N % 2 == 0) else 1
    if N % images_per_block:
        raise ValueError("images_per_block must divide the batch size")
    nb = images_per_block
    G = N // nb

    Hp, Wp = H + 2 * p, W + 2 * p
    L_img = Hp * Wp                       # per-image lane stride (input & output)
    max_off = (KH - 1) * Wp + (KW - 1)    # largest tap lane shift
    M_blk = nb * L_img                    # meaningful output lanes per grid step
    M_out = _round_up(M_blk, 128)         # lane-dense compute / store width
    L_in = _round_up(M_out + max_off, 128)

    # ---- padded [x ; h_prev] in Wp-strided flat layout (~1.3x raw bytes) ----
    comb = jnp.concatenate([x, h_prev], axis=1)               # (N, C_all, H, W)
    comb = jnp.pad(comb, ((0, 0), (0, 0), (p, p), (p, p)))    # (N, C_all, Hp, Wp)
    comb = comb.reshape(G, nb, C_all, L_img)
    comb = jnp.transpose(comb, (0, 2, 1, 3)).reshape(G, C_all, M_blk)
    x_in = jnp.pad(comb, ((0, 0), (0, 0), (0, L_in - M_blk))).astype(matmul_dtype)

    # Cell state in the same flat layout (stays f32: recurrent accumulator).
    c_p = jnp.pad(c_prev, ((0, 0), (0, 0), (0, 2 * p), (0, 2 * p)))
    c_p = c_p.reshape(G, nb, C_out, L_img)
    c_p = jnp.transpose(c_p, (0, 2, 1, 3)).reshape(G, C_out, M_blk)
    c_in = jnp.pad(c_p, ((0, 0), (0, 0), (0, M_out - M_blk)))

    # ---- per-tap weights in gates^T form; bias kept separate (f32 add) ----
    # weight[o, ci, kh, kw] -> w_taps[kh*KW + kw, o, ci]
    w_taps = jnp.transpose(weight, (2, 3, 0, 1)).reshape(KH * KW, 4 * C_out, C_all)
    w_taps = w_taps.astype(matmul_dtype)
    b_col = bias.reshape(4 * C_out, 1).astype(jnp.float32)

    # Lane shift of tap (kh, kw):  input flat index = output flat index + kh*Wp + kw.
    tap_offsets = tuple(kh * Wp + kw for kh in range(KH) for kw in range(KW))

    kernel = functools.partial(_convlstm_kernel, C_out=C_out,
                               tap_offsets=tap_offsets, m_out=M_out)

    h_flat, c_flat = pl.pallas_call(
        kernel,
        out_shape=(jax.ShapeDtypeStruct((G, C_out, M_out), h_dtype),
                   jax.ShapeDtypeStruct((G, C_out, M_out), jnp.float32)),
        grid_spec=pltpu.PrefetchScalarGridSpec(
            num_scalar_prefetch=0,
            grid=(G,),   # independent image blocks; "parallel" -> both TCs on v7x
            in_specs=[
                pl.BlockSpec((1, C_all, L_in), lambda g: (g, 0, 0)),
                pl.BlockSpec((KH * KW, 4 * C_out, C_all), lambda g: (0, 0, 0)),
                pl.BlockSpec((4 * C_out, 1), lambda g: (0, 0)),
                pl.BlockSpec((1, C_out, M_out), lambda g: (g, 0, 0)),
            ],
            out_specs=[
                pl.BlockSpec((1, C_out, M_out), lambda g: (g, 0, 0)),
                pl.BlockSpec((1, C_out, M_out), lambda g: (g, 0, 0)),
            ],
        ),
        compiler_params=pltpu.CompilerParams(
            dimension_semantics=("parallel",)),
    )(x_in, w_taps, b_col, c_in)

    # ---- back to dense NCHW (valid lanes only; garbage rows/cols dropped) ----
    def _unflatten(a):
        a = a[:, :, :M_blk].reshape(G, C_out, nb, L_img)
        a = jnp.transpose(a, (0, 2, 1, 3)).reshape(N, C_out, Hp, Wp)
        return a[:, :, :H, :W]

    return _unflatten(h_flat), _unflatten(c_flat)


def _reference(x, h_prev, c_prev, weight, bias, *, padding):
    """Pure-JAX reference matching the PyTorch module semantics."""
    combined = jnp.concatenate([x, h_prev], axis=1)
    gates = lax.conv_general_dilated(
        combined, weight, window_strides=(1, 1),
        padding=[(padding, padding), (padding, padding)],
        dimension_numbers=("NCHW", "OIHW", "NCHW"))
    gates = gates + bias.reshape(1, -1, 1, 1)
    i, f, o, g = jnp.split(gates, 4, axis=1)
    i, f, o = jax.nn.sigmoid(i), jax.nn.sigmoid(f), jax.nn.sigmoid(o)
    g = jnp.tanh(g)
    c_next = f * c_prev + i * g
    h_next = o * jnp.tanh(c_next)
    return h_next, c_next


if __name__ == "__main__":
    # Small shapes consistent with the module.
    N, C_in, C_out, H, W = 2, 4, 8, 16, 16
    KH = KW = 3
    PAD = 1

    key = jax.random.PRNGKey(0)
    kx, kh_, kc, kw_, kb = jax.random.split(key, 5)

    x = jax.random.normal(kx, (N, C_in, H, W), dtype=jnp.float32)
    h_prev = jax.random.normal(kh_, (N, C_out, H, W), dtype=jnp.float32)
    c_prev = jax.random.normal(kc, (N, C_out, H, W), dtype=jnp.float32)
    weight = 0.1 * jax.random.normal(kw_, (4 * C_out, C_in + C_out, KH, KW),
                                     dtype=jnp.float32)
    bias = 0.1 * jax.random.normal(kb, (4 * C_out,), dtype=jnp.float32)

    h_ref, c_ref = _reference(x, h_prev, c_prev, weight, bias, padding=PAD)

    # 1) Default config: bf16 matmul operands (f32 accumulate / f32 state),
    #    2 parallel grid steps (one image each).  Tolerance sized for bf16
    #    operand rounding.
    cell_bf16 = jax.jit(functools.partial(conv_lstm_cell, padding=PAD))
    h1, c1 = cell_bf16(x, h_prev, c_prev, weight, bias)
    jax.block_until_ready((h1, c1))
    assert jnp.allclose(h1, h_ref, atol=5e-2, rtol=5e-2), "h_next (bf16) mismatch"
    assert jnp.allclose(c1, c_ref, atol=5e-2, rtol=5e-2), "c_next (bf16) mismatch"

    # 2) f32 matmul operands, same grid.  (TPU f32 matmuls may themselves run
    #    at reduced operand precision by default, so keep a modest tolerance.)
    cell_f32 = jax.jit(functools.partial(conv_lstm_cell, padding=PAD,
                                         matmul_dtype=jnp.float32))
    h2, c2 = cell_f32(x, h_prev, c_prev, weight, bias)
    jax.block_until_ready((h2, c2))
    assert jnp.allclose(h2, h_ref, atol=3e-2, rtol=3e-2), "h_next (f32) mismatch"
    assert jnp.allclose(c2, c_ref, atol=3e-2, rtol=3e-2), "c_next (f32) mismatch"

    # 3) Whole batch folded into one grid step (v5e/v6e single-TC mode) —
    #    exercises the lane-axis batch-folding path.
    cell_fold = jax.jit(functools.partial(conv_lstm_cell, padding=PAD,
                                          matmul_dtype=jnp.float32,
                                          images_per_block=N))
    h3, c3 = cell_fold(x, h_prev, c_prev, weight, bias)
    jax.block_until_ready((h3, c3))
    assert jnp.allclose(h3, h_ref, atol=3e-2, rtol=3e-2), "h_next (folded) mismatch"
    assert jnp.allclose(c3, c_ref, atol=3e-2, rtol=3e-2), "c_next (folded) mismatch"

    print("KERNEL_OK")
</pallas_src>

<mosaic_0001>
module attributes {stable_mosaic.version = 11 : i64} {
  func.func @_convlstm_kernel(%arg0: i32, %arg1: memref<1x12x512xbf16, #tpu.memory_space<vmem>>, %arg2: memref<9x32x12xbf16, #tpu.memory_space<vmem>>, %arg3: memref<32x1xf32, #tpu.memory_space<vmem>>, %arg4: memref<1x8x384xf32, #tpu.memory_space<vmem>>, %arg5: memref<1x8x384xf32, #tpu.memory_space<vmem>>, %arg6: memref<1x8x384xf32, #tpu.memory_space<vmem>>) attributes {dimension_semantics = [#tpu.dimension_semantics<parallel>], iteration_bounds = array<i64: 2>, scalar_prefetch = 0 : i64, scratch_operands = 0 : i64, tpu.core_type = #tpu.core_type<tc>, window_params = [{transform_indices = @transform_0, window_bounds = array<i64: 1, 12, 512>}, {pipeline_mode = #tpu.pipeline_mode<synchronous>, transform_indices = @transform_1, window_bounds = array<i64: 9, 32, 12>}, {pipeline_mode = #tpu.pipeline_mode<synchronous>, transform_indices = @transform_2, window_bounds = array<i64: 32, 1>}, {transform_indices = @transform_3, window_bounds = array<i64: 1, 8, 384>}, {transform_indices = @transform_4, window_bounds = array<i64: 1, 8, 384>}, {transform_indices = @transform_5, window_bounds = array<i64: 1, 8, 384>}]} {
    %c0 = arith.constant 0 : index
    %c0_0 = arith.constant 0 : index
    %c0_1 = arith.constant 0 : index
    %0 = vector.load %arg1[%c0, %c0_0, %c0_1] : memref<1x12x512xbf16, #tpu.memory_space<vmem>>, vector<1x12x384xbf16>
    %1 = vector.shape_cast %0 : vector<1x12x384xbf16> to vector<12x384xbf16>
    %c0_2 = arith.constant 0 : index
    %c0_3 = arith.constant 0 : index
    %c0_4 = arith.constant 0 : index
    %2 = vector.load %arg2[%c0_2, %c0_3, %c0_4] : memref<9x32x12xbf16, #tpu.memory_space<vmem>>, vector<1x32x12xbf16>
    %3 = vector.shape_cast %2 : vector<1x32x12xbf16> to vector<32x12xbf16>
    %cst = arith.constant dense<0.000000e+00> : vector<32x384xf32>
    %4 = tpu.matmul %3, %1, %cst {dimension_numbers = #tpu.dot_dimension_numbers<[1], [0], [0], [1], [0, 0, 1, 1], [], []>} : vector<32x12xbf16>, vector<12x384xbf16>, vector<32x384xf32> -> vector<32x384xf32>
    %c0_5 = arith.constant 0 : index
    %c0_6 = arith.constant 0 : index
    %c1 = arith.constant 1 : index
    %5 = vector.load %arg1[%c0_5, %c0_6, %c1] : memref<1x12x512xbf16, #tpu.memory_space<vmem>>, vector<1x12x384xbf16>
    %6 = vector.shape_cast %5 : vector<1x12x384xbf16> to vector<12x384xbf16>
    %c1_7 = arith.constant 1 : index
    %c0_8 = arith.constant 0 : index
    %c0_9 = arith.constant 0 : index
    %7 = vector.load %arg2[%c1_7, %c0_8, %c0_9] : memref<9x32x12xbf16, #tpu.memory_space<vmem>>, vector<1x32x12xbf16>
    %8 = vector.shape_cast %7 : vector<1x32x12xbf16> to vector<32x12xbf16>
    %cst_10 = arith.constant dense<0.000000e+00> : vector<32x384xf32>
    %9 = tpu.matmul %8, %6, %cst_10 {dimension_numbers = #tpu.dot_dimension_numbers<[1], [0], [0], [1], [0, 0, 1, 1], [], []>} : vector<32x12xbf16>, vector<12x384xbf16>, vector<32x384xf32> -> vector<32x384xf32>
    %10 = arith.addf %4, %9 : vector<32x384xf32>
    %c0_11 = arith.constant 0 : index
    %c0_12 = arith.constant 0 : index
    %c2 = arith.constant 2 : index
    %11 = vector.load %arg1[%c0_11, %c0_12, %c2] : memref<1x12x512xbf16, #tpu.memory_space<vmem>>, vector<1x12x384xbf16>
    %12 = vector.shape_cast %11 : vector<1x12x384xbf16> to vector<12x384xbf16>
    %c2_13 = arith.constant 2 : index
    %c0_14 = arith.constant 0 : index
    %c0_15 = arith.constant 0 : index
    %13 = vector.load %arg2[%c2_13, %c0_14, %c0_15] : memref<9x32x12xbf16, #tpu.memory_space<vmem>>, vector<1x32x12xbf16>
    %14 = vector.shape_cast %13 : vector<1x32x12xbf16> to vector<32x12xbf16>
    %cst_16 = arith.constant dense<0.000000e+00> : vector<32x384xf32>
    %15 = tpu.matmul %14, %12, %cst_16 {dimension_numbers = #tpu.dot_dimension_numbers<[1], [0], [0], [1], [0, 0, 1, 1], [], []>} : vector<32x12xbf16>, vector<12x384xbf16>, vector<32x384xf32> -> vector<32x384xf32>
    %16 = arith.addf %10, %15 : vector<32x384xf32>
    %c0_17 = arith.constant 0 : index
    %c0_18 = arith.constant 0 : index
    %c18 = arith.constant 18 : index
    %17 = vector.load %arg1[%c0_17, %c0_18, %c18] : memref<1x12x512xbf16, #tpu.memory_space<vmem>>, vector<1x12x384xbf16>
    %18 = vector.shape_cast %17 : vector<1x12x384xbf16> to vector<12x384xbf16>
    %c3 = arith.constant 3 : index
    %c0_19 = arith.constant 0 : index
    %c0_20 = arith.constant 0 : index
    %19 = vector.load %arg2[%c3, %c0_19, %c0_20] : memref<9x32x12xbf16, #tpu.memory_space<vmem>>, vector<1x32x12xbf16>
    %20 = vector.shape_cast %19 : vector<1x32x12xbf16> to vector<32x12xbf16>
    %cst_21 = arith.constant dense<0.000000e+00> : vector<32x384xf32>
    %21 = tpu.matmul %20, %18, %cst_21 {dimension_numbers = #tpu.dot_dimension_numbers<[1], [0], [0], [1], [0, 0, 1, 1], [], []>} : vector<32x12xbf16>, vector<12x384xbf16>, vector<32x384xf32> -> vector<32x384xf32>
    %22 = arith.addf %16, %21 : vector<32x384xf32>
    %c0_22 = arith.constant 0 : index
    %c0_23 = arith.constant 0 : index
    %c19 = arith.constant 19 : index
    %23 = vector.load %arg1[%c0_22, %c0_23, %c19] : memref<1x12x512xbf16, #tpu.memory_space<vmem>>, vector<1x12x384xbf16>
    %24 = vector.shape_cast %23 : vector<1x12x384xbf16> to vector<12x384xbf16>
    %c4 = arith.constant 4 : index
    %c0_24 = arith.constant 0 : index
    %c0_25 = arith.constant 0 : index
    %25 = vector.load %arg2[%c4, %c0_24, %c0_25] : memref<9x32x12xbf16, #tpu.memory_space<vmem>>, vector<1x32x12xbf16>
    %26 = vector.shape_cast %25 : vector<1x32x12xbf16> to vector<32x12xbf16>
    %cst_26 = arith.constant dense<0.000000e+00> : vector<32x384xf32>
    %27 = tpu.matmul %26, %24, %cst_26 {dimension_numbers = #tpu.dot_dimension_numbers<[1], [0], [0], [1], [0, 0, 1, 1], [], []>} : vector<32x12xbf16>, vector<12x384xbf16>, vector<32x384xf32> -> vector<32x384xf32>
    %28 = arith.addf %22, %27 : vector<32x384xf32>
    %c0_27 = arith.constant 0 : index
    %c0_28 = arith.constant 0 : index
    %c20 = arith.constant 20 : index
    %29 = vector.load %arg1[%c0_27, %c0_28, %c20] : memref<1x12x512xbf16, #tpu.memory_space<vmem>>, vector<1x12x384xbf16>
    %30 = vector.shape_cast %29 : vector<1x12x384xbf16> to vector<12x384xbf16>
    %c5 = arith.constant 5 : index
    %c0_29 = arith.constant 0 : index
    %c0_30 = arith.constant 0 : index
    %31 = vector.load %arg2[%c5, %c0_29, %c0_30] : memref<9x32x12xbf16, #tpu.memory_space<vmem>>, vector<1x32x12xbf16>
    %32 = vector.shape_cast %31 : vector<1x32x12xbf16> to vector<32x12xbf16>
    %cst_31 = arith.constant dense<0.000000e+00> : vector<32x384xf32>
    %33 = tpu.matmul %32, %30, %cst_31 {dimension_numbers = #tpu.dot_dimension_numbers<[1], [0], [0], [1], [0, 0, 1, 1], [], []>} : vector<32x12xbf16>, vector<12x384xbf16>, vector<32x384xf32> -> vector<32x384xf32>
    %34 = arith.addf %28, %33 : vector<32x384xf32>
    %c0_32 = arith.constant 0 : index
    %c0_33 = arith.constant 0 : index
    %c36 = arith.constant 36 : index
    %35 = vector.load %arg1[%c0_32, %c0_33, %c36] : memref<1x12x512xbf16, #tpu.memory_space<vmem>>, vector<1x12x384xbf16>
    %36 = vector.shape_cast %35 : vector<1x12x384xbf16> to vector<12x384xbf16>
    %c6 = arith.constant 6 : index
    %c0_34 = arith.constant 0 : index
    %c0_35 = arith.constant 0 : index
    %37 = vector.load %arg2[%c6, %c0_34, %c0_35] : memref<9x32x12xbf16, #tpu.memory_space<vmem>>, vector<1x32x12xbf16>
    %38 = vector.shape_cast %37 : vector<1x32x12xbf16> to vector<32x12xbf16>
    %cst_36 = arith.constant dense<0.000000e+00> : vector<32x384xf32>
    %39 = tpu.matmul %38, %36, %cst_36 {dimension_numbers = #tpu.dot_dimension_numbers<[1], [0], [0], [1], [0, 0, 1, 1], [], []>} : vector<32x12xbf16>, vector<12x384xbf16>, vector<32x384xf32> -> vector<32x384xf32>
    %40 = arith.addf %34, %39 : vector<32x384xf32>
    %c0_37 = arith.constant 0 : index
    %c0_38 = arith.constant 0 : index
    %c37 = arith.constant 37 : index
    %41 = vector.load %arg1[%c0_37, %c0_38, %c37] : memref<1x12x512xbf16, #tpu.memory_space<vmem>>, vector<1x12x384xbf16>
    %42 = vector.shape_cast %41 : vector<1x12x384xbf16> to vector<12x384xbf16>
    %c7 = arith.constant 7 : index
    %c0_39 = arith.constant 0 : index
    %c0_40 = arith.constant 0 : index
    %43 = vector.load %arg2[%c7, %c0_39, %c0_40] : memref<9x32x12xbf16, #tpu.memory_space<vmem>>, vector<1x32x12xbf16>
    %44 = vector.shape_cast %43 : vector<1x32x12xbf16> to vector<32x12xbf16>
    %cst_41 = arith.constant dense<0.000000e+00> : vector<32x384xf32>
    %45 = tpu.matmul %44, %42, %cst_41 {dimension_numbers = #tpu.dot_dimension_numbers<[1], [0], [0], [1], [0, 0, 1, 1], [], []>} : vector<32x12xbf16>, vector<12x384xbf16>, vector<32x384xf32> -> vector<32x384xf32>
    %46 = arith.addf %40, %45 : vector<32x384xf32>
    %c0_42 = arith.constant 0 : index
    %c0_43 = arith.constant 0 : index
    %c38 = arith.constant 38 : index
    %47 = vector.load %arg1[%c0_42, %c0_43, %c38] : memref<1x12x512xbf16, #tpu.memory_space<vmem>>, vector<1x12x384xbf16>
    %48 = vector.shape_cast %47 : vector<1x12x384xbf16> to vector<12x384xbf16>
    %c8 = arith.constant 8 : index
    %c0_44 = arith.constant 0 : index
    %c0_45 = arith.constant 0 : index
    %49 = vector.load %arg2[%c8, %c0_44, %c0_45] : memref<9x32x12xbf16, #tpu.memory_space<vmem>>, vector<1x32x12xbf16>
    %50 = vector.shape_cast %49 : vector<1x32x12xbf16> to vector<32x12xbf16>
    %cst_46 = arith.constant dense<0.000000e+00> : vector<32x384xf32>
    %51 = tpu.matmul %50, %48, %cst_46 {dimension_numbers = #tpu.dot_dimension_numbers<[1], [0], [0], [1], [0, 0, 1, 1], [], []>} : vector<32x12xbf16>, vector<12x384xbf16>, vector<32x384xf32> -> vector<32x384xf32>
    %52 = arith.addf %46, %51 : vector<32x384xf32>
    %c0_47 = arith.constant 0 : index
    %c0_48 = arith.constant 0 : index
    %53 = vector.load %arg3[%c0_47, %c0_48] : memref<32x1xf32, #tpu.memory_space<vmem>>, vector<32x1xf32>
    %54 = vector.broadcast %53 : vector<32x1xf32> to vector<32x384xf32>
    %55 = arith.addf %52, %54 : vector<32x384xf32>
    %56 = vector.extract_strided_slice %55 {offsets = [0, 0], sizes = [8, 384], strides = [1, 1]} : vector<32x384xf32> to vector<8x384xf32>
    %57 = arith.negf %56 : vector<8x384xf32>
    %58 = math.exp %57 : vector<8x384xf32>
    %cst_49 = arith.constant 1.000000e+00 : f32
    %59 = vector.broadcast %cst_49 : f32 to vector<8x384xf32>
    %60 = arith.addf %59, %58 : vector<8x384xf32>
    %61 = arith.divf %59, %60 : vector<8x384xf32>
    %62 = vector.extract_strided_slice %55 {offsets = [8, 0], sizes = [8, 384], strides = [1, 1]} : vector<32x384xf32> to vector<8x384xf32>
    %63 = arith.negf %62 : vector<8x384xf32>
    %64 = math.exp %63 : vector<8x384xf32>
    %cst_50 = arith.constant 1.000000e+00 : f32
    %65 = vector.broadcast %cst_50 : f32 to vector<8x384xf32>
    %66 = arith.addf %65, %64 : vector<8x384xf32>
    %67 = arith.divf %65, %66 : vector<8x384xf32>
    %68 = vector.extract_strided_slice %55 {offsets = [16, 0], sizes = [8, 384], strides = [1, 1]} : vector<32x384xf32> to vector<8x384xf32>
    %69 = arith.negf %68 : vector<8x384xf32>
    %70 = math.exp %69 : vector<8x384xf32>
    %cst_51 = arith.constant 1.000000e+00 : f32
    %71 = vector.broadcast %cst_51 : f32 to vector<8x384xf32>
    %72 = arith.addf %71, %70 : vector<8x384xf32>
    %73 = arith.divf %71, %72 : vector<8x384xf32>
    %74 = vector.extract_strided_slice %55 {offsets = [24, 0], sizes = [8, 384], strides = [1, 1]} : vector<32x384xf32> to vector<8x384xf32>
    %75 = math.tanh %74 : vector<8x384xf32>
    %c0_52 = arith.constant 0 : index
    %c0_53 = arith.constant 0 : index
    %c0_54 = arith.constant 0 : index
    %76 = vector.load %arg4[%c0_52, %c0_53, %c0_54] : memref<1x8x384xf32, #tpu.memory_space<vmem>>, vector<1x8x384xf32>
    %77 = vector.shape_cast %76 : vector<1x8x384xf32> to vector<8x384xf32>
    %78 = arith.mulf %67, %77 : vector<8x384xf32>
    %79 = arith.mulf %61, %75 : vector<8x384xf32>
    %80 = arith.addf %78, %79 : vector<8x384xf32>
    %81 = math.tanh %80 : vector<8x384xf32>
    %82 = arith.mulf %73, %81 : vector<8x384xf32>
    %c0_55 = arith.constant 0 : index
    %c0_56 = arith.constant 0 : index
    %c0_57 = arith.constant 0 : index
    %83 = vector.load %arg5[%c0_55, %c0_56, %c0_57] : memref<1x8x384xf32, #tpu.memory_space<vmem>>, vector<1x8x384xf32>
    %84 = vector.shape_cast %83 : vector<1x8x384xf32> to vector<8x384xf32>
    %85 = vector.shape_cast %82 : vector<8x384xf32> to vector<1x8x384xf32>
    tpu.vector_store %arg5[%c0_55, %c0_56, %c0_57], %85 {strides = array<i32>} : memref<1x8x384xf32, #tpu.memory_space<vmem>>, vector<1x8x384xf32>,
    %c0_58 = arith.constant 0 : index
    %c0_59 = arith.constant 0 : index
    %c0_60 = arith.constant 0 : index
    %86 = vector.load %arg6[%c0_58, %c0_59, %c0_60] : memref<1x8x384xf32, #tpu.memory_space<vmem>>, vector<1x8x384xf32>
    %87 = vector.shape_cast %86 : vector<1x8x384xf32> to vector<8x384xf32>
    %88 = vector.shape_cast %80 : vector<8x384xf32> to vector<1x8x384xf32>
    tpu.vector_store %arg6[%c0_58, %c0_59, %c0_60], %88 {strides = array<i32>} : memref<1x8x384xf32, #tpu.memory_space<vmem>>, vector<1x8x384xf32>,
    return
  }
  func.func @transform_0(%arg0: i32) -> (i32, i32, i32) {
    %c0_i32 = arith.constant 0 : i32
    %c0_i32_0 = arith.constant 0 : i32
    %c0_i32_1 = arith.constant 0 : i32
    return %arg0, %c0_i32, %c0_i32_0 : i32, i32, i32
  }
  func.func @transform_1(%arg0: i32) -> (i32, i32, i32) {
    %c0_i32 = arith.constant 0 : i32
    %c0_i32_0 = arith.constant 0 : i32
    %c0_i32_1 = arith.constant 0 : i32
    %c0_i32_2 = arith.constant 0 : i32
    return %c0_i32, %c0_i32_0, %c0_i32_1 : i32, i32, i32
  }
  func.func @transform_2(%arg0: i32) -> (i32, i32) {
    %c0_i32 = arith.constant 0 : i32
    %c0_i32_0 = arith.constant 0 : i32
    %c0_i32_1 = arith.constant 0 : i32
    return %c0_i32, %c0_i32_0 : i32, i32
  }
  func.func @transform_3(%arg0: i32) -> (i32, i32, i32) {
    %c0_i32 = arith.constant 0 : i32
    %c0_i32_0 = arith.constant 0 : i32
    %c0_i32_1 = arith.constant 0 : i32
    return %arg0, %c0_i32, %c0_i32_0 : i32, i32, i32
  }
  func.func @transform_4(%arg0: i32) -> (i32, i32, i32) {
    %c0_i32 = arith.constant 0 : i32
    %c0_i32_0 = arith.constant 0 : i32
    %c0_i32_1 = arith.constant 0 : i32
    return %arg0, %c0_i32, %c0_i32_0 : i32, i32, i32
  }
  func.func @transform_5(%arg0: i32) -> (i32, i32, i32) {
    %c0_i32 = arith.constant 0 : i32
    %c0_i32_0 = arith.constant 0 : i32
    %c0_i32_1 = arith.constant 0 : i32
    return %arg0, %c0_i32, %c0_i32_0 : i32, i32, i32
  }
}

</mosaic_0001>

<bundles_post_ra>
// kernel: conv_lstm_cell.1
= control target key start
LH: loop header
LB: loop body
LE: loop exit
PB: predicated region body
PF: predicated region fallthrough
CT: control target
= control target key end

     0   :  { %s2320_s18 = smov 0   ;;  %s2590_s0 = inlined_call_operand.vmem [shape: bf16[2,12,512], index: 0, kind: input, shape index: {}]   ;;  %s2591_s1 = inlined_call_operand.vmem [shape: bf16[9,32,12], index: 1, kind: input, shape index: {}]   ;;  %s2592_s2 = inlined_call_operand.vmem [shape: f32[32,1], index: 2, kind: input, shape index: {}]   ;;  %s2593_s3 = inlined_call_operand.vmem [shape: f32[2,8,384], index: 3, kind: input, shape index: {}]   ;;  %s2594_s4 = inlined_call_operand.vmem [shape: f32[2,8,384], index: 4, kind: output, shape index: {0}]   ;;  %s2595_s5 = inlined_call_operand.vmem [shape: f32[2,8,384], index: 5, kind: output, shape index: {1}]  }
   0x1 LB: > { %s1872_s19 = sadd.s32 4294967295, %s2279_s18   ;;  %p1876_p0 = scmp.ge.s32.totalorder %s2279_s18, 1  ;;  %s2279_s18 = sphi %s2320_s18, %s16_s18  }
   0x2   : > { %p200_p1 = scmp.lt.s32.totalorder %s2279_s18, 3 }
   0x4   : > { %p201_p2 = pnand %p1876_p0, %p200_p1 }
   0x5   : > { %p238_p3 = scmp.lt.s32.totalorder (!%p201_p2), %s1872_s19, 1  ;;  %v2281_v0 = vmov (!%p201_p2), 0   ;;  %s2282_s24 = smov (!%p201_p2), 127   ;;  %vm308_vm0 = vcmask (!%p201_p2), 1039360   ;;  %vm319_vm1 = vcmask (!%p201_p2), 1045504   ;;  %v2206_v12 = vld [vmem:[%s2591_s1 + $0x10] sm:$0xff] (!%p201_p2)  }
   0x6   : > { %204 = sbr.rel (%p201_p2) target bundleno = 526 (0x20e), region = 36  ;;  %361 = vmatprep.mubr.bf16.mxu1 (!%p201_p2), %v2281_v0  ;;  %637 = vmatprep.mubr.bf16.mxu0 (!%p201_p2), %v2281_v0  ;;  %s2283_s25 = smov (!%p201_p2), 126   ;;  %vm586_vm2 = vcmask (!%p201_p2), 1031168   ;;  %v1655_v13 = vld [vmem:[%s2592_s2] sm:$0xff] (!%p201_p2)  ;;  %v1656_v14 = vld [vmem:[%s2592_s2 + $0x8] sm:$0xff] (!%p201_p2)  ;;  %vm312_vm3 = vcmask (!%p201_p2), 97280  }
   0x7   : > { %2198 = vset.pattern.permute.xlu0 (!%p201_p2), %v2281_v0  ;;  %2199 = vset.pattern.permute.xlu1 (!%p201_p2), %v2281_v0  ;;  %s2284_s26 = smov (!%p201_p2), 110   ;;  %s2285_s27 = smov (!%p201_p2), 109   ;;  %v1657_v19 = vld [vmem:[%s2592_s2 + $0x10] sm:$0xff] (!%p201_p2)  ;;  %v1658_v21 = vld [vmem:[%s2592_s2 + $0x18] sm:$0xff] (!%p201_p2)  ;;  %v2397_v27 = vld [vmem:[%s2591_s1 + $0x20] sm:$0xff] (!%p201_p2)   ;;  %vm742_vm4 = vcmask (!%p201_p2), 900096  }
   0x8   : > { %s2286_s28 = smov (!%p201_p2), 108   ;;  %s2287_s29 = smov (!%p201_p2), 92   ;;  %v2207_v26 = vld [vmem:[%s2591_s1 + $0x18] sm:$0xff] (!%p201_p2)   ;;  %v2414_v35 = vld [vmem:[%s2591_s1 + $0x28] sm:$0xff] (!%p201_p2)   ;;  %vm898_vm5 = vcmask (!%p201_p2), 891904   ;;  %v2211_v43 = vld [vmem:[%s2591_s1 + $0x30] sm:$0xff] (!%p201_p2)  }
   0x9   : > { %s2288_s30 = smov (!%p201_p2), 91   ;;  %s2289_s6 = smov (!%p201_p2), 90   ;;  %v2212_v44 = vld [vmem:[%s2591_s1] sm:$0xff] (!%p201_p2)   ;;  %vm1054_vm6 = vcmask (!%p201_p2), 883712   ;;  %v2213_v52 = vld [vmem:[%s2591_s1 + $0x8] sm:$0xff] (!%p201_p2)   ;;  %v2214_v53 = vld [vmem:[%s2591_s1 + $0x38] sm:$0xff] (!%p201_p2)  }
   0xa   : > { %v2215_v57 = vld [vmem:[%s2591_s1 + $0x40] sm:$0xff] (!%p201_p2)   ;;  %vm1210_vm7 = vcmask (!%p201_p2), 752640   ;;  %vm1366_vm8 = vcmask (!%p201_p2), 744448   ;;  %vm1522_vm9 = vcmask (!%p201_p2), 736256  }
   0xd   : > { %s2597_s19 = smov (!%p238_p3, %s1872_s19), 1 }
   0xe   : > { %s1993_s20 = sshll.u32 %s2597_s19, 5 }
   0xf   : > { %s2336_s23 = scalar_lea.vmem %s2590_s0, %s1993_s20 }
  0x10   : > { %v2200_v1 = vld [vmem:[%s2336_s23 + $0x8] ss:$16 sps:$4 sm:$0x3f]   ;;  %v2342_v2 = vld [vmem:[%s2336_s23] ss:$16 sps:$4 sm:$0x3f]  }
  0x11   : > { %304 = vrot.lane.b32.xlu1 %v2200_v1, %s2282_s24  ;;  %v2204_v3 = vld [vmem:[%s2336_s23 + $0xc] ss:$16 sps:$4 sm:$0x3f]   ;;  %v2346_v4 = vld [vmem:[%s2336_s23 + $0x4] ss:$16 sps:$4 sm:$0x3f]   ;;  %300 = vrot.lane.b32.xlu0 %v2342_v2, %s2282_s24 }
  0x12   : > { %v453_v37 = vsel %vm319_vm1, %v2342_v2, 0  ;;  %v2210_v39 = vld [vmem:[%s2336_s23 + $0x8] ss:$16 sps:$4 sm:$0x3f]  }
  0x13   : > { %v459_v46 = vsel %vm319_vm1, %v2210_v39, 0 }
  0x15   : > { %306 = vrot.lane.b32.xlu1 %v2204_v3, %s2282_s24  ;;  %302 = vrot.lane.b32.xlu0 %v2346_v4, %s2282_s24 }
  0x19   : > { %580 = vrot.lane.b32.xlu1 %v2346_v4, %s2283_s25  ;;  %578 = vrot.lane.b32.xlu0 %v2342_v2, %s2283_s25 }
  0x1d   : > { %734 = vrot.lane.b32.xlu1 %v2342_v2, %s2284_s26  ;;  %582 = vrot.lane.b32.xlu0 %v2200_v1, %s2283_s25 }
  0x21   : > { %738 = vrot.lane.b32.xlu1 %v2200_v1, %s2284_s26  ;;  %736 = vrot.lane.b32.xlu0 %v2346_v4, %s2284_s26 }
  0x25   : > { %890 = vrot.lane.b32.xlu1 %v2342_v2, %s2285_s27  ;;  %584 = vrot.lane.b32.xlu0 %v2204_v3, %s2283_s25 }
  0x29   : > { %894 = vrot.lane.b32.xlu1 %v2200_v1, %s2285_s27  ;;  %892 = vrot.lane.b32.xlu0 %v2346_v4, %s2285_s27 }
  0x2d   : > { %1046 = vrot.lane.b32.xlu1 %v2342_v2, %s2286_s28  ;;  %740 = vrot.lane.b32.xlu0 %v2204_v3, %s2284_s26 }
  0x31   : > { %1050 = vrot.lane.b32.xlu1 %v2200_v1, %s2286_s28  ;;  %1048 = vrot.lane.b32.xlu0 %v2346_v4, %s2286_s28 }
  0x35   : > { %1052 = vrot.lane.b32.xlu1 %v2204_v3, %s2286_s28  ;;  %896 = vrot.lane.b32.xlu0 %v2204_v3, %s2285_s27 }
  0x39   : > { %1204 = vrot.lane.b32.xlu1 %v2346_v4, %s2287_s29  ;;  %1202 = vrot.lane.b32.xlu0 %v2342_v2, %s2287_s29 }
  0x3d   : > { %1208 = vrot.lane.b32.xlu1 %v2204_v3, %s2287_s29  ;;  %1206 = vrot.lane.b32.xlu0 %v2200_v1, %s2287_s29 }
  0x41   : > { %1360 = vrot.lane.b32.xlu1 %v2346_v4, %s2288_s30  ;;  %1358 = vrot.lane.b32.xlu0 %v2342_v2, %s2288_s30 }
  0x45   : > { %1364 = vrot.lane.b32.xlu1 %v2204_v3, %s2288_s30  ;;  %1362 = vrot.lane.b32.xlu0 %v2200_v1, %s2288_s30  ;;  %s2563_s30 = smul.u32 24, %s2597_s19 }
  0x47   : > { %s2569_s8 = scalar_lea.vmem %s2593_s3, %s2563_s30  ;;  %s2577_s10 = scalar_lea.vmem %s2595_s5, %s2563_s30 }
  0x48   : > { %s252_s13 = scalar_lea.vmem %s2594_s4, %s2563_s30 }
  0x49   : > { %1516 = vrot.lane.b32.xlu1 %v2346_v4, %s2289_s6  ;;  %1514 = vrot.lane.b32.xlu0 %v2342_v2, %s2289_s6  ;;  %v2216_v2 = vld [vmem:[%s2591_s1 + $0x48] sm:$0xff]  }
  0x4d   : > { %1520 = vrot.lane.b32.xlu1 %v2204_v3, %s2289_s6  ;;  %1518 = vrot.lane.b32.xlu0 %v2200_v1, %s2289_s6 }
  0x51   : > { %1661 = vperm.xlu0 %2198, %v1655_v13   ;;  %1666 = vperm.xlu1 %2199, %v1656_v14   ;;  %v2218_v13 = vld [vmem:[%s2591_s1 + $0x58] sm:$0xff]  }
  0x55   : > { %1671 = vperm.xlu1 %2199, %v1657_v19   ;;  %1676 = vperm.xlu0 %2198, %v1658_v21   ;;  %v2219_v19 = vld [vmem:[%s2591_s1 + $0x60] sm:$0xff]  }
  0x83   : > { %v305_v5 = vpop.permute.xlu1 %304  ;;  %v301_v6 = vpop.permute.xlu0 %300 }
  0x87   : > { %v307_v7 = vpop.permute.xlu1 %306  ;;  %v303_v8 = vpop.permute.xlu0 %302 }
  0x88   : > { %v310_v9 = vsel %vm308_vm0, %v303_v8, %v305_v5  ;;  %v309_v10 = vsel %vm308_vm0, %v301_v6, %v303_v8  ;;  %v311_v15 = vsel %vm308_vm0, %v305_v5, %v307_v7  ;;  %v2217_v8 = vld [vmem:[%s2591_s1 + $0x50] sm:$0xff]  }
  0x89   : > { %1892 = vmatprep.subr.msk.bf16.mxu1 %vm319_vm1, %v310_v9  ;;  %v321_v11 = vsel %vm319_vm1, %v309_v10, 0  ;;  %v327_v20 = vsel %vm319_vm1, %v311_v15, 0 }
  0x8a   : > { %330 = vmatpush1.bf16.msra.mxu1 %v321_v11 }
  0x8b   : > { %v581_v16 = vpop.permute.xlu1 %580  ;;  %2171 = vmatprep.subr.msk.bf16.mxu1 %vm319_vm1, %v311_v15  ;;  %v579_v17 = vpop.permute.xlu0 %578 }
  0x8c   : > { %v587_v18 = vsel %vm586_vm2, %v579_v17, %v581_v16 }
  0x8d   : > { %1893 = vmatmul.mubr.msk.bf16.vlgmr.msra.gmra.mrb[0].mxu1 %vm312_vm3, %v2206_v12  ;;  %v597_v24 = vsel %vm319_vm1, %v587_v18, 0 }
  0x8e   : > { %2022 = vmatpush3.bf16.msra.mxu1 %v327_v20  ;;  %371 = vmatprep.mubr.bf16.mxu1 %v2281_v0 }
  0x8f   : > { %v735_v22 = vpop.permute.xlu1 %734  ;;  %v583_v23 = vpop.permute.xlu0 %582  ;;  %1900 = vmatprep.subr.msk.bf16.mxu1 %vm319_vm1, %v2346_v4 }
  0x90   : > { %v588_v25 = vsel %vm586_vm2, %v581_v16, %v583_v23 }
  0x91   : > { %1911 = vmatprep.subr.msk.bf16.mxu0 %vm319_vm1, %v588_v25 }
  0x92   : > { %606 = vmatpush1.bf16.msra.mxu0 %v597_v24 }
  0x93   : > { %v2399_v28 = vpop.permute.xlu1 %738  ;;  %v737_v29 = vpop.permute.xlu0 %736 }
  0x94   : > { %v743_v30 = vsel %vm742_vm4, %v735_v22, %v737_v29  ;;  %v744_v31 = vsel %vm742_vm4, %v737_v29, %v2399_v28 }
  0x95   : > { %1894 = vmatmul.mubr.msk.bf16.gmra.mrb[4].mxu1 %vm312_vm3, %v2207_v26  ;;  %1912 = vmatmul.mubr.msk.bf16.vlgmr.msra.gmra.mrb[0].mxu0 %vm312_vm3, %v2397_v27  ;;  %v753_v32 = vsel %vm319_vm1, %v743_v30, 0 }
  0x96   : > { %2023 = vmatprep.mubr.msk.bf16.mxu1 %vm312_vm3, %v2206_v12  ;;  %647 = vmatprep.mubr.bf16.mxu0 %v2281_v0 }
  0x97   : > { %v891_v33 = vpop.permute.xlu1 %890  ;;  %v585_v34 = vpop.permute.xlu0 %584  ;;  %1922 = vmatprep.subr.msk.bf16.mxu0 %vm319_vm1, %v744_v31 }
  0x98   : > { %762 = vmatpush1.bf16.msra.mxu0 %v753_v32  ;;  %v589_v50 = vsel %vm586_vm2, %v583_v23, %v585_v34  ;;  %v2222_v32 = vld [vmem:[%s2591_s1 + $0x78] sm:$0xff]  }
  0x99   : > { %v603_v61 = vsel %vm319_vm1, %v589_v50, 0 }
  0x9b   : > { %v2416_v36 = vpop.permute.xlu1 %894  ;;  %v893_v38 = vpop.permute.xlu0 %892 }
  0x9c   : > { %v900_v40 = vsel %vm898_vm5, %v893_v38, %v2416_v36  ;;  %v899_v45 = vsel %vm898_vm5, %v891_v33, %v893_v38 }
  0x9d   : > { %2024 = vmatmul.mubr.msk.bf16.vlgmr.msra.gmra.mrb[8].mxu1 %vm312_vm3, %v2207_v26  ;;  %1913 = vmatmul.mubr.msk.bf16.gmra.mrb[4].mxu0 %vm312_vm3, %v2414_v35  ;;  %v909_v49 = vsel %vm319_vm1, %v899_v45, 0  ;;  %v2220_v26 = vld [vmem:[%s2591_s1 + $0x68] sm:$0xff]  }
  0x9e   : > { %462 = vmatpush1.bf16.msra.mxu1 %v453_v37  ;;  %493 = vmatprep.mubr.bf16.mxu1 %v2281_v0  ;;  %v2224_v37 = vld [vmem:[%s2591_s1 + $0x88] sm:$0xff]  }
  0x9f   : > { %v1047_v41 = vpop.permute.xlu1 %1046  ;;  %2172 = vmatprep.subr.msk.bf16.mxu1 %vm319_vm1, %v2210_v39  ;;  %793 = vmatprep.mubr.bf16.mxu0 %v2281_v0  ;;  %v741_v42 = vpop.permute.xlu0 %740 }
  0xa0   : > { %1933 = vmatprep.subr.msk.bf16.mxu0 %vm319_vm1, %v900_v40  ;;  %v745_v63 = vsel %vm742_vm4, %v2399_v28, %v741_v42 }
  0xa1   : > { %v759_v7 = vsel %vm319_vm1, %v745_v63, 0 }
  0xa3   : > { %v1049_v47 = vpop.permute.xlu0 %1048  ;;  %v2438_v48 = vpop.permute.xlu1 %1050 }
  0xa4   : > { %v1056_v51 = vsel %vm1054_vm6, %v1049_v47, %v2438_v48  ;;  %v1055_v58 = vsel %vm1054_vm6, %v1047_v41, %v1049_v47 }
  0xa5   : > { %1923 = vmatmul.mubr.msk.bf16.vlgmr.msra.gmra.mrb[0].mxu0 %vm312_vm3, %v2211_v43  ;;  %1901 = vmatmul.mubr.msk.bf16.vlgmr.msra.gmra.mrb[0].mxu1 %vm312_vm3, %v2212_v44  ;;  %v1065_v62 = vsel %vm319_vm1, %v1055_v58, 0 }
  0xa6   : > { %2028 = vmatpush3.bf16.msra.mxu1 %v459_v46  ;;  %503 = vmatprep.mubr.bf16.mxu1 %v2281_v0 }
  0xa7   : > { %2173 = vmatprep.subr.msk.bf16.mxu1 %vm319_vm1, %v589_v50  ;;  %803 = vmatprep.mubr.bf16.mxu0 %v2281_v0  ;;  %v897_v54 = vpop.permute.xlu0 %896  ;;  %v1053_v55 = vpop.permute.xlu1 %1052 }
  0xa8   : > { %918 = vmatpush1.bf16.msra.mxu0 %v909_v49  ;;  %v901_v5 = vsel %vm898_vm5, %v2416_v36, %v897_v54  ;;  %v1057_v16 = vsel %vm1054_vm6, %v2438_v48, %v1053_v55  ;;  %v2223_v36 = vld [vmem:[%s2591_s1 + $0x80] sm:$0xff]  }
  0xa9   : > { %1944 = vmatprep.subr.msk.bf16.mxu0 %vm319_vm1, %v1056_v51  ;;  %v915_v17 = vsel %vm319_vm1, %v901_v5, 0  ;;  %v1071_v25 = vsel %vm319_vm1, %v1057_v16, 0 }
  0xab   : > { %v1203_v56 = vpop.permute.xlu0 %1202  ;;  %v1205_v59 = vpop.permute.xlu1 %1204 }
  0xac   : > { %v1211_v6 = vsel %vm1210_vm7, %v1203_v56, %v1205_v59 }
  0xad   : > { %1902 = vmatmul.mubr.msk.bf16.gmra.mrb[4].mxu1 %vm312_vm3, %v2213_v52  ;;  %1924 = vmatmul.mubr.msk.bf16.gmra.mrb[4].mxu0 %vm312_vm3, %v2214_v53  ;;  %v1221_v11 = vsel %vm319_vm1, %v1211_v6, 0 }
  0xae   : > { %2029 = vmatprep.mubr.msk.bf16.mxu1 %vm312_vm3, %v2212_v44  ;;  %949 = vmatprep.mubr.bf16.mxu0 %v2281_v0 }
  0xaf   : > { %v1207_v60 = vpop.permute.xlu0 %1206  ;;  %v1209_v3 = vpop.permute.xlu1 %1208 }
  0xb0   : > { %v1212_v1 = vsel %vm1210_vm7, %v1205_v59, %v1207_v60  ;;  %v1213_v24 = vsel %vm1210_vm7, %v1207_v60, %v1209_v3 }
  0xb1   : > { %v1227_v29 = vsel %vm319_vm1, %v1213_v24, 0 }
  0xb3   : > { %v1359_v4 = vpop.permute.xlu0 %1358  ;;  %v1361_v9 = vpop.permute.xlu1 %1360 }
  0xb4   : > { %v1367_v18 = vsel %vm1366_vm8, %v1359_v4, %v1361_v9 }
  0xb5   : > { %1934 = vmatmul.mubr.msk.bf16.vlgmr.msra.gmra.mrb[0].mxu0 %vm312_vm3, %v2215_v57  ;;  %2030 = vmatmul.mubr.msk.bf16.vlgmr.msra.gmra.mrb[8].mxu1 %vm312_vm3, %v2213_v52  ;;  %v1377_v22 = vsel %vm319_vm1, %v1367_v18, 0 }
  0xb6   : > { %2034 = vmatpush3.bf16.msra.mxu1 %v603_v61  ;;  %959 = vmatprep.mubr.bf16.mxu0 %v2281_v0 }
  0xb7   : > { %2174 = vmatprep.subr.msk.bf16.mxu1 %vm319_vm1, %v745_v63  ;;  %2035 = vmatprep.mubr.msk.bf16.mxu1 %vm312_vm3, %v2397_v27  ;;  %v1363_v10 = vpop.permute.xlu0 %1362  ;;  %v1365_v14 = vpop.permute.xlu1 %1364  ;;  %v2221_v27 = vld [vmem:[%s2591_s1 + $0x70] sm:$0xff]  }
  0xb8   : > { %1074 = vmatpush1.bf16.msra.mxu0 %v1065_v62  ;;  %v1368_v12 = vsel %vm1366_vm8, %v1361_v9, %v1363_v10  ;;  %v1369_v30 = vsel %vm1366_vm8, %v1363_v10, %v1365_v14 }
  0xb9   : > { %1955 = vmatprep.subr.msk.bf16.mxu0 %vm319_vm1, %v1212_v1  ;;  %v1383_v34 = vsel %vm319_vm1, %v1369_v30, 0 }
  0xbb   : > { %v1515_v15 = vpop.permute.xlu0 %1514  ;;  %v1517_v20 = vpop.permute.xlu1 %1516 }
  0xbc   : > { %v1523_v28 = vsel %vm1522_vm9, %v1515_v15, %v1517_v20 }
  0xbd   : > { %1935 = vmatmul.mubr.msk.bf16.gmra.mrb[4].mxu0 %vm312_vm3, %v2216_v2  ;;  %v1533_v31 = vsel %vm319_vm1, %v1523_v28, 0 }
  0xbe   : > { %1105 = vmatprep.mubr.bf16.mxu0 %v2281_v0 }
  0xbf   : > { %v1519_v21 = vpop.permute.xlu0 %1518  ;;  %v1521_v33 = vpop.permute.xlu1 %1520 }
  0xc0   : > { %v1524_v23 = vsel %vm1522_vm9, %v1517_v20, %v1519_v21 }
  0xc1   : > { %2036 = vmatmul.mubr.msk.bf16.vlgmr.msra.gmra.mrb[8].mxu1 %vm312_vm3, %v2414_v35  ;;  %v1525_v35 = vsel %vm1522_vm9, %v1519_v21, %v1521_v33 }
  0xc2   : > { %2040 = vmatpush3.bf16.msra.mxu1 %v759_v7  ;;  %2041 = vmatprep.mubr.msk.bf16.mxu1 %vm312_vm3, %v2211_v43  ;;  %v1539_v38 = vsel %vm319_vm1, %v1525_v35, 0 }
  0xc3   : > { %2175 = vmatprep.subr.msk.bf16.mxu1 %vm319_vm1, %v901_v5 }
  0xc5   : > { %1945 = vmatmul.mubr.msk.bf16.vlgmr.msra.gmra.mrb[0].mxu0 %vm312_vm3, %v2217_v8 }
  0xc6   : > { %1115 = vmatprep.mubr.bf16.mxu0 %v2281_v0  ;;  %1230 = vmatpush1.bf16.msra.mxu0 %v1221_v11 }
  0xc7   : > { %1966 = vmatprep.subr.msk.bf16.mxu0 %vm319_vm1, %v1368_v12 }
  0xcd   : > { %2042 = vmatmul.mubr.msk.bf16.vlgmr.msra.gmra.mrb[8].mxu1 %vm312_vm3, %v2214_v53  ;;  %1946 = vmatmul.mubr.msk.bf16.gmra.mrb[4].mxu0 %vm312_vm3, %v2218_v13 }
  0xce   : > { %2046 = vmatpush3.bf16.msra.mxu1 %v915_v17  ;;  %1261 = vmatprep.mubr.bf16.mxu0 %v2281_v0 }
  0xcf   : > { %2176 = vmatprep.subr.msk.bf16.mxu1 %vm319_vm1, %v1057_v16  ;;  %2047 = vmatprep.mubr.msk.bf16.mxu1 %vm312_vm3, %v2215_v57 }
  0xd0   : > { %v1662_v47 = vpop.permute.xlu0 %1661  ;;  %v1667_v52 = vpop.permute.xlu1 %1666 }
  0xd4   : > { %v1677_v10 = vpop.permute.xlu0 %1676 }
  0xd5   : > { %1956 = vmatmul.mubr.msk.bf16.vlgmr.msra.gmra.mrb[0].mxu0 %vm312_vm3, %v2219_v19 }
  0xd6   : > { %1271 = vmatprep.mubr.bf16.mxu0 %v2281_v0  ;;  %1386 = vmatpush1.bf16.msra.mxu0 %v1377_v22 }
  0xd7   : > { %1977 = vmatprep.subr.msk.bf16.mxu0 %vm319_vm1, %v1524_v23 }
  0xd9   : > { %2048 = vmatmul.mubr.msk.bf16.vlgmr.msra.gmra.mrb[8].mxu1 %vm312_vm3, %v2216_v2  ;;  %v1672_v2 = vpop.permute.xlu1 %1671 }
  0xda   : > { %2052 = vmatpush3.bf16.msra.mxu1 %v1071_v25  ;;  %2053 = vmatprep.mubr.msk.bf16.mxu1 %vm312_vm3, %v2217_v8 }
  0xdb   : > { %2177 = vmatprep.subr.msk.bf16.mxu1 %vm319_vm1, %v1213_v24 }
  0xdd   : > { %1957 = vmatmul.mubr.msk.bf16.gmra.mrb[4].mxu0 %vm312_vm3, %v2220_v26 }
  0xde   : > { %1417 = vmatprep.mubr.bf16.mxu0 %v2281_v0 }
  0xe5   : > { %2054 = vmatmul.mubr.msk.bf16.vlgmr.msra.gmra.mrb[8].mxu1 %vm312_vm3, %v2218_v13  ;;  %1967 = vmatmul.mubr.msk.bf16.vlgmr.msra.gmra.mrb[0].mxu0 %vm312_vm3, %v2221_v27 }
  0xe6   : > { %2058 = vmatpush3.bf16.msra.mxu1 %v1227_v29  ;;  %1427 = vmatprep.mubr.bf16.mxu0 %v2281_v0 }
  0xe7   : > { %2178 = vmatprep.subr.msk.bf16.mxu1 %vm319_vm1, %v1369_v30  ;;  %2059 = vmatprep.mubr.msk.bf16.mxu1 %vm312_vm3, %v2219_v19 }
  0xe8   : > { %1542 = vmatpush1.bf16.msra.mxu0 %v1533_v31 }
  0xed   : > { %1968 = vmatmul.mubr.msk.bf16.gmra.mrb[4].mxu0 %vm312_vm3, %v2222_v32 }
  0xee   : > { %1573 = vmatprep.mubr.bf16.mxu0 %v2281_v0 }
  0xf1   : > { %2060 = vmatmul.mubr.msk.bf16.vlgmr.msra.gmra.mrb[8].mxu1 %vm312_vm3, %v2220_v26 }
  0xf2   : > { %2064 = vmatpush3.bf16.msra.mxu1 %v1383_v34  ;;  %2065 = vmatprep.mubr.msk.bf16.mxu1 %vm312_vm3, %v2221_v27 }
  0xf3   : > { %2179 = vmatprep.subr.msk.bf16.mxu1 %vm319_vm1, %v1525_v35 }
  0xf5   : > { %1978 = vmatmul.mubr.msk.bf16.vlgmr.msra.gmra.mrb[0].mxu0 %vm312_vm3, %v2223_v36 }
  0xf6   : > { %1583 = vmatprep.mubr.bf16.mxu0 %v2281_v0 }
  0xfd   : > { %2066 = vmatmul.mubr.msk.bf16.vlgmr.msra.gmra.mrb[8].mxu1 %vm312_vm3, %v2222_v32  ;;  %1979 = vmatmul.mubr.msk.bf16.gmra.mrb[4].mxu0 %vm312_vm3, %v2224_v37 }
  0xfe   : > { %2070 = vmatpush3.bf16.msra.mxu1 %v1539_v38  ;;  %2071 = vmatprep.mubr.msk.bf16.mxu1 %vm312_vm3, %v2223_v36 }
 0x109   : > { %2072 = vmatmul.mubr.msk.bf16.vlgmr.msra.gmra.mrb[8].mxu1 %vm312_vm3, %v2224_v37 }
 0x178   : > { %v495_v39 = vpop.f32.mrb[0].mxu1 }
 0x179   : > { %v497_v40 = vpop.f32.mrb[1].mxu1 }
 0x17a   : > { %v499_v41 = vpop.f32.mrb[2].mxu1 }
 0x17b   : > { %v501_v42 = vpop.f32.mrb[3].mxu1 }
 0x180   : > { %v505_v0 = vpop.f32.mrb[4].mxu1 }
 0x181   : > { %v507_v43 = vpop.f32.mrb[5].mxu1 }
 0x182   : > { %v509_v44 = vpop.f32.mrb[6].mxu1 }
 0x183   : > { %v511_v45 = vpop.f32.mrb[7].mxu1 }
 0x1c8   : > { %v1575_v46 = vpop.f32.mrb[0].mxu0 }
 0x1c9   : > { %v2075_v48 = vadd.f32 %v1575_v46, %v495_v39  ;;  %v1577_v49 = vpop.f32.mrb[1].mxu0  ;;  %v1748_v39 = vld [vmem:[%s2569_s8] sm:$0xff] }
 0x1ca   : > { %v2076_v50 = vadd.f32 %v1577_v49, %v497_v40  ;;  %v1579_v51 = vpop.f32.mrb[2].mxu0 }
 0x1cb   : > { %v2077_v53 = vadd.f32 %v1579_v51, %v499_v41  ;;  %v1679_v54 = vadd.f32 %v2075_v48, %v1662_v47  ;;  %v1581_v55 = vpop.f32.mrb[3].mxu0 }
 0x1cc   : > { %v1680_v56 = vadd.f32 %v2076_v50, %v1662_v47  ;;  %v2078_v57 = vadd.f32 %v1581_v55, %v501_v42 }
 0x1cd   : > { %v1982_v58 = vmul.f32 -1.442695, %v1679_v54  ;;  %v1682_v59 = vadd.f32 %v2077_v53, %v1667_v52 }
 0x1ce   : > { %v1983_v60 = vmul.f32 -1.442695, %v1680_v56  ;;  %v1683_v61 = vadd.f32 %v2078_v57, %v1667_v52 }
 0x1cf   : > { %2225 = vpow2.f32 %v1982_v58  ;;  %v1985_v62 = vmul.f32 -1.442695, %v1682_v59 }
 0x1d0   : > { %2227 = vpow2.f32 %v1983_v60  ;;  %v1986_v63 = vmul.f32 -1.442695, %v1683_v61  ;;  %v1585_v1 = vpop.f32.mrb[4].mxu0 }
 0x1d1   : > { %2229 = vpow2.f32 %v1985_v62  ;;  %v2079_v3 = vadd.f32 %v1585_v1, %v505_v0  ;;  %v1587_v4 = vpop.f32.mrb[5].mxu0  ;;  %v1749_v0 = vld [vmem:[%s2569_s8 + $0x8] sm:$0xff] }
 0x1d2   : > { %2231 = vpow2.f32 %v1986_v63  ;;  %v2080_v5 = vadd.f32 %v1587_v4, %v507_v43  ;;  %v1589_v6 = vpop.f32.mrb[6].mxu0  ;;  %v1750_v4 = vld [vmem:[%s2569_s8 + $0x10] sm:$0xff] }
 0x1d3   : > { %v1685_v7 = vadd.f32 %v2079_v3, %v1672_v2  ;;  %v2081_v8 = vadd.f32 %v1589_v6, %v509_v44  ;;  %v1591_v9 = vpop.f32.mrb[7].mxu0 }
 0x1d4   : > { %v1686_v11 = vadd.f32 %v2080_v5, %v1672_v2  ;;  %v2082_v12 = vadd.f32 %v1591_v9, %v511_v45 }
 0x1d5   : > { %v1988_v13 = vmul.f32 -1.442695, %v1685_v7  ;;  %v1688_v15 = vadd.f32 %v2081_v8, %v1677_v10 }
 0x1d6   : > { %v1989_v14 = vmul.f32 -1.442695, %v1686_v11  ;;  %v1689_v16 = vadd.f32 %v2082_v12, %v1677_v10 }
 0x1d7   : > { %2233 = vpow2.f32 %v1988_v13 }
 0x1d8   : > { %2235 = vpow2.f32 %v1989_v14 }
 0x1d9   : > { %v2226_v17 = vpop.eup %2225  ;;  %2237 = vtanh.f32 %v1688_v15 }
 0x1da   : > { %v2228_v18 = vpop.eup %2227  ;;  %v1700_v19 = vadd.f32 1.0, %v2226_v17  ;;  %2239 = vtanh.f32 %v1689_v16 }
 0x1db   : > { %v2230_v20 = vpop.eup %2229  ;;  %v1701_v21 = vadd.f32 1.0, %v2228_v18 }
 0x1dc   : > { %v2232_v22 = vpop.eup %2231  ;;  %2241 = vrcp.f32 %v1700_v19  ;;  %v1718_v23 = vadd.f32 1.0, %v2230_v20  ;;  %v2073_v24 = vpop.f32.mrb[8].mxu1 }
 0x1dd   : > { %2243 = vrcp.f32 %v1701_v21  ;;  %v1719_v25 = vadd.f32 1.0, %v2232_v22  ;;  %v1628_v26 = vpop.f32.mrb[9].mxu1  ;;  %v1687_v33 = vadd.f32 %v2073_v24, %v1672_v2 }
 0x1de   : > { %2245 = vrcp.f32 %v1718_v23  ;;  %v1681_v27 = vadd.f32 %v1662_v47, %v1628_v26  ;;  %v2074_v28 = vpop.f32.mrb[10].mxu1 }
 0x1df   : > { %2247 = vrcp.f32 %v1719_v25  ;;  %v1631_v29 = vpop.f32.mrb[11].mxu1  ;;  %v1990_v40 = vmul.f32 -1.442695, %v1687_v33  ;;  %v1690_v51 = vadd.f32 %v2074_v28, %v1677_v10 }
 0x1e0   : > { %v1984_v30 = vmul.f32 -1.442695, %v1681_v27  ;;  %v1684_v31 = vadd.f32 %v1667_v52, %v1631_v29 }
 0x1e1   : > { %v2234_v32 = vpop.eup %2233 }
 0x1e2   : > { %2249 = vpow2.f32 %v1984_v30  ;;  %v1987_v34 = vmul.f32 -1.442695, %v1684_v31  ;;  %v2236_v35 = vpop.eup %2235  ;;  %v1736_v42 = vadd.f32 1.0, %v2234_v32 }
 0x1e3   : > { %v2238_v36 = vpop.eup %2237  ;;  %v1737_v45 = vadd.f32 1.0, %v2236_v35 }
 0x1e4   : > { %v2240_v37 = vpop.eup %2239  ;;  %2251 = vpow2.f32 %v1987_v34 }
 0x1e5   : > { %2253 = vpow2.f32 %v1990_v40 }
 0x1e6   : > { %v2242_v38 = vpop.eup %2241  ;;  %2255 = vrcp.f32 %v1736_v42 }
 0x1e7   : > { %v2244_v41 = vpop.eup %2243  ;;  %v1754_v43 = vmul.f32 %v2242_v38, %v2238_v36  ;;  %2257 = vrcp.f32 %v1737_v45 }
 0x1e8   : > { %v2246_v44 = vpop.eup %2245  ;;  %v1755_v46 = vmul.f32 %v2244_v41, %v2240_v37 }
 0x1e9   : > { %v2248_v47 = vpop.eup %2247  ;;  %v1751_v48 = vmul.f32 %v2246_v44, %v1748_v39 }
 0x1ea   : > { %v1752_v49 = vmul.f32 %v2248_v47, %v1749_v0 }
 0x1eb   : > { %v1757_v50 = vadd.f32 %v1754_v43, %v1751_v48 }
 0x1ec   : > { %v2250_v52 = vpop.eup %2249  ;;  %v1758_v53 = vadd.f32 %v1755_v46, %v1752_v49 }
 0x1ed   : > { %2259 = vtanh.f32 %v1757_v50  ;;  %1769 = vst [vmem:[%s2577_s10] sm:$0xff] %v1757_v50  ;;  %v1702_v54 = vadd.f32 1.0, %v2250_v52 }
 0x1ee   : > { %2261 = vtanh.f32 %v1758_v53  ;;  %1770 = vst [vmem:[%s2577_s10 + $0x8] sm:$0xff] %v1758_v53  ;;  %v2252_v55 = vpop.eup %2251 }
 0x1ef   : > { %2263 = vtanh.f32 %v1690_v51  ;;  %v1720_v56 = vadd.f32 1.0, %v2252_v55  ;;  %v2254_v57 = vpop.eup %2253 }
 0x1f0   : > { %2265 = vrcp.f32 %v1702_v54  ;;  %v2256_v58 = vpop.eup %2255  ;;  %v1738_v6 = vadd.f32 1.0, %v2254_v57 }
 0x1f1   : > { %2267 = vrcp.f32 %v1720_v56  ;;  %v2258_v59 = vpop.eup %2257 }
 0x1f2   : > { %2269 = vrcp.f32 %v1738_v6 }
 0x1f7   : > { %v2260_v60 = vpop.eup %2259 }
 0x1f8   : > { %v2262_v61 = vpop.eup %2261  ;;  %v1763_v62 = vmul.f32 %v2260_v60, %v2256_v58 }
 0x1f9   : > { %v2264_v63 = vpop.eup %2263  ;;  %v1764_v1 = vmul.f32 %v2262_v61, %v2258_v59 }
 0x1fa   : > { %v2266_v2 = vpop.eup %2265  ;;  %1766 = vst [vmem:[%s252_s13] sm:$0xff] %v1763_v62 }
 0x1fb   : > { %1767 = vst [vmem:[%s252_s13 + $0x8] sm:$0xff] %v1764_v1  ;;  %v1756_v3 = vmul.f32 %v2266_v2, %v2264_v63  ;;  %v2268_v5 = vpop.eup %2267 }
 0x1fc   : > { %v1753_v7 = vmul.f32 %v2268_v5, %v1750_v4  ;;  %v2270_v9 = vpop.eup %2269 }
 0x1fe   : > { %v1759_v8 = vadd.f32 %v1756_v3, %v1753_v7 }
 0x200   : > { %2271 = vtanh.f32 %v1759_v8  ;;  %1771 = vst [vmem:[%s2577_s10 + $0x10] sm:$0xff] %v1759_v8 }
 0x20a   : > { %v2272_v10 = vpop.eup %2271 }
 0x20b   : > { %v1765_v11 = vmul.f32 %v2272_v10, %v2270_v9 }
 0x20d   : > { %1768 = vst [vmem:[%s252_s13 + $0x10] sm:$0xff] %v1765_v11 }
 0x20e PF: > { %s16_s18 = sadd.s32 1, %s2279_s18  }
 0x20f   : > { %p13_p4 = scmp.ge.s32.totalorder %s16_s18, 4  }
 0x211   :  { %15 = sbr.rel (!%p13_p4) target bundleno = 1 (0x1), region = 89 }

</bundles_post_ra>
